<compile_context>
chip_gen: v7x
topology: tpu7x:2x2x1
jax: 0.10.0
libtpu: 0.0.40
codegen_flags: <defaults>
</compile_context>

<pallas_src>
import functools

import jax
import jax.numpy as jnp
from jax import lax
from jax.experimental import pallas as pl
from jax.experimental.pallas import tpu as pltpu


def _round_up(n, m):
    return ((n + m - 1) // m) * m


def rnn_chunk_kernel(xw_ref, whh_ref, wfc_ref, bfc_ref, out_ref, h_ref, *,
                     chunk, dout_pad):
    """One time-chunk of the recurrence with the FC head interleaved per step.

    xw_ref : (B_pad, H_pad)        f32        x @ W_ih^T + b_ih + b_hh (loop invariant)
    whh_ref: (H_pad, H_pad)        mm dtype   W_hh^T (zero-padded)
    wfc_ref: (H_pad, Dout_pad)     mm dtype   W_fc^T (zero-padded)
    bfc_ref: (1, Dout_pad)         f32        b_fc (zero-padded)
    out_ref: (B_pad, chunk*Dout_pad)          step t of this chunk at lanes [t*Dout_pad, (t+1)*Dout_pad)
    h_ref  : VMEM (B_pad, H_pad)   f32        persistent hidden-state carry across grid steps
    """
    @pl.when(pl.program_id(0) == 0)
    def _():
        h_ref[...] = jnp.zeros_like(h_ref)

    xw = xw_ref[...]
    whh = whh_ref[...]
    wfc = wfc_ref[...]
    bfc = bfc_ref[...]
    mm_dtype = whh.dtype

    h = h_ref[...]
    # Small static unroll over the chunk; the grid supplies the outer time loop,
    # so instruction count and VMEM stay bounded by `chunk`, not T.
    for t in range(chunk):
        # Recurrence (serial, latency-bound): tanh(xw + h_{t-1} @ W_hh^T).
        # Padded rows/cols stay exactly zero (tanh(0) == 0, zero-padded weights).
        h = jnp.tanh(
            xw + jnp.dot(h.astype(mm_dtype), whh,
                         preferred_element_type=jnp.float32))
        # FC head interleaved per step (not on the recurrence critical path).
        # Static, 128-aligned lane slice -> unmasked lane-dense store.
        out_ref[:, t * dout_pad:(t + 1) * dout_pad] = (
            jnp.dot(h.astype(mm_dtype), wfc,
                    preferred_element_type=jnp.float32) + bfc
        ).astype(out_ref.dtype)
    h_ref[...] = h


def rnn_forward(x, T, params, *, chunk=8, matmul_dtype=jnp.bfloat16):
    """x: (B, D_in) float32.  Returns (B, T, D_out) float32 (batch_first)."""
    w_ih, w_hh, b_ih, b_hh, w_fc, b_fc = params
    B, _ = x.shape
    H = w_hh.shape[0]
    D_out = w_fc.shape[0]

    # Hardware-aligned padded sizes: sublane multiple of 8, lane multiple of 128.
    B_pad = _round_up(max(B, 8), 8)
    H_pad = _round_up(H, 128)
    D_out_pad = _round_up(D_out, 128)

    chunk = max(1, min(chunk, T))
    T_pad = _round_up(T, chunk)          # extra trailing steps computed, then dropped
    n_chunks = T_pad // chunk

    # Hoisted loop-invariant input projection (same x is fed at every timestep).
    xw = x.astype(jnp.float32) @ w_ih.T.astype(jnp.float32) + (b_ih + b_hh)   # (B, H)

    # Zero-pad once (padded hidden columns / batch rows stay exactly zero).
    xw_p = jnp.zeros((B_pad, H_pad), jnp.float32).at[:B, :H].set(xw)
    whh_p = (jnp.zeros((H_pad, H_pad), jnp.float32)
             .at[:H, :H].set(w_hh.T).astype(matmul_dtype))
    wfc_p = (jnp.zeros((H_pad, D_out_pad), jnp.float32)
             .at[:H, :D_out].set(w_fc.T).astype(matmul_dtype))
    bfc_p = jnp.zeros((1, D_out_pad), jnp.float32).at[0, :D_out].set(b_fc)

    kernel = functools.partial(rnn_chunk_kernel, chunk=chunk, dout_pad=D_out_pad)

    out_p = pl.pallas_call(
        kernel,
        out_shape=jax.ShapeDtypeStruct((B_pad, T_pad * D_out_pad), jnp.float32),
        grid=(n_chunks,),
        in_specs=[
            pl.BlockSpec((B_pad, H_pad), lambda i: (0, 0)),         # xw (constant block)
            pl.BlockSpec((H_pad, H_pad), lambda i: (0, 0)),         # W_hh^T
            pl.BlockSpec((H_pad, D_out_pad), lambda i: (0, 0)),     # W_fc^T
            pl.BlockSpec((1, D_out_pad), lambda i: (0, 0)),         # b_fc
        ],
        out_specs=pl.BlockSpec((B_pad, chunk * D_out_pad), lambda i: (0, i)),
        scratch_shapes=[pltpu.VMEM((B_pad, H_pad), jnp.float32)],   # hidden-state carry
        compiler_params=pltpu.CompilerParams(
            dimension_semantics=("arbitrary",),   # time is sequential (carried state)
        ),
    )(xw_p, whh_p, wfc_p, bfc_p)

    # (B_pad, T_pad*Dout_pad) -> (B_pad, T_pad, Dout_pad) -> unpad.  Already
    # batch_first; no transpose (and no extra HBM round trip) needed.
    out = out_p.reshape(B_pad, T_pad, D_out_pad)[:B, :T, :D_out]
    return out


def init_params(key, input_dim, hidden_dim, output_dim):
    """Deterministic init. RNN weights/biases ~ U(-0.2, 0.2) (init_rnn_weights);
    fc uses the same scheme for determinism (synthetic weights)."""
    ks = jax.random.split(key, 6)
    u = lambda k, shape, lim: jax.random.uniform(
        k, shape, dtype=jnp.float32, minval=-lim, maxval=lim)
    w_ih = u(ks[0], (hidden_dim, input_dim), 0.2)
    w_hh = u(ks[1], (hidden_dim, hidden_dim), 0.2)
    b_ih = u(ks[2], (hidden_dim,), 0.2)
    b_hh = u(ks[3], (hidden_dim,), 0.2)
    w_fc = u(ks[4], (output_dim, hidden_dim), 0.2)
    b_fc = u(ks[5], (output_dim,), 0.2)
    return (w_ih, w_hh, b_ih, b_hh, w_fc, b_fc)


def rnn_forward_ref(x, T, params, matmul_dtype=jnp.float32):
    """Pure-JAX reference.  `matmul_dtype` applies the same matmul-input cast as
    the kernel (f32 accumulation either way) so structure/indexing can be checked
    at tight tolerance independent of bf16 rounding."""
    w_ih, w_hh, b_ih, b_hh, w_fc, b_fc = params
    B = x.shape[0]
    H = w_hh.shape[0]
    xw = x @ w_ih.T + b_ih + b_hh
    whh_t = w_hh.T.astype(matmul_dtype)
    wfc_t = w_fc.T.astype(matmul_dtype)

    def step(h, _):
        h_new = jnp.tanh(
            xw + jnp.dot(h.astype(matmul_dtype), whh_t,
                         preferred_element_type=jnp.float32,
                         precision=lax.Precision.HIGHEST))
        y = jnp.dot(h_new.astype(matmul_dtype), wfc_t,
                    preferred_element_type=jnp.float32,
                    precision=lax.Precision.HIGHEST) + b_fc
        return h_new, y

    _, ys = jax.lax.scan(step, jnp.zeros((B, H), jnp.float32), None, length=T)
    return jnp.transpose(ys, (1, 0, 2))   # (B, T, D_out)


if __name__ == "__main__":
    B, D_IN, H, D_OUT, T = 2, 16, 32, 8, 8

    key = jax.random.PRNGKey(0)
    k_x, k_p = jax.random.split(key)
    x = jax.random.normal(k_x, (B, D_IN), dtype=jnp.float32)
    params = init_params(k_p, D_IN, H, D_OUT)

    # chunk=4 -> grid=(2,): exercises the chunked time grid and the persistent
    # hidden-state carry across grid steps.
    out = rnn_forward(x, T, params, chunk=4, matmul_dtype=jnp.bfloat16)
    out = jax.block_until_ready(out)
    assert out.shape == (B, T, D_OUT), out.shape

    # Precision-matched reference (same bf16 matmul inputs, f32 accumulation):
    # validates kernel structure/indexing tightly.
    ref_matched = jax.block_until_ready(
        rnn_forward_ref(x, T, params, matmul_dtype=jnp.bfloat16))
    assert jnp.allclose(out, ref_matched, atol=1e-3, rtol=1e-3), \
        "mismatch vs precision-matched reference"

    # Full-f32 module reference: bf16-matmul kernel should still track it
    # closely (f32 accumulation, f32 carry/tanh).
    ref_f32 = jax.block_until_ready(
        rnn_forward_ref(x, T, params, matmul_dtype=jnp.float32))
    assert jnp.allclose(out, ref_f32, atol=3e-2, rtol=3e-2), \
        "mismatch vs float32 reference"

    print("KERNEL_OK")
</pallas_src>

<mosaic_0001>
module attributes {stable_mosaic.version = 11 : i64} {
  func.func @rnn_chunk_kernel(%arg0: i32, %arg1: memref<8x128xf32, #tpu.memory_space<vmem>>, %arg2: memref<128x128xbf16, #tpu.memory_space<vmem>>, %arg3: memref<128x128xbf16, #tpu.memory_space<vmem>>, %arg4: memref<1x128xf32, #tpu.memory_space<vmem>>, %arg5: memref<8x512xf32, #tpu.memory_space<vmem>>, %arg6: memref<8x128xf32, #tpu.memory_space<vmem>>) attributes {dimension_semantics = [#tpu.dimension_semantics<arbitrary>], iteration_bounds = array<i64: 2>, scalar_prefetch = 0 : i64, scratch_operands = 1 : i64, tpu.core_type = #tpu.core_type<tc>, window_params = [{pipeline_mode = #tpu.pipeline_mode<synchronous>, transform_indices = @transform_0, window_bounds = array<i64: 8, 128>}, {pipeline_mode = #tpu.pipeline_mode<synchronous>, transform_indices = @transform_1, window_bounds = array<i64: 128, 128>}, {pipeline_mode = #tpu.pipeline_mode<synchronous>, transform_indices = @transform_2, window_bounds = array<i64: 128, 128>}, {pipeline_mode = #tpu.pipeline_mode<synchronous>, transform_indices = @transform_3, window_bounds = array<i64: 1, 128>}, {transform_indices = @transform_4, window_bounds = array<i64: 8, 512>}]} {
    %c0_i32 = arith.constant 0 : i32
    %0 = arith.cmpi eq, %arg0, %c0_i32 : i32
    %1 = arith.extui %0 : i1 to i32
    %c0_i32_0 = arith.constant 0 : i32
    %2 = arith.cmpi ne, %1, %c0_i32_0 : i32
    scf.if %2 {
      %cst_24 = arith.constant 0.000000e+00 : f32
      %45 = vector.broadcast %cst_24 : f32 to vector<8x128xf32>
      %c0_25 = arith.constant 0 : index
      %c0_26 = arith.constant 0 : index
      %46 = vector.load %arg6[%c0_25, %c0_26] : memref<8x128xf32, #tpu.memory_space<vmem>>, vector<8x128xf32>
      tpu.vector_store %arg6[%c0_25, %c0_26], %45 {strides = array<i32>} : memref<8x128xf32, #tpu.memory_space<vmem>>, vector<8x128xf32>,
    } else {
    }
    %c0 = arith.constant 0 : index
    %c0_1 = arith.constant 0 : index
    %3 = vector.load %arg1[%c0, %c0_1] : memref<8x128xf32, #tpu.memory_space<vmem>>, vector<8x128xf32>
    %c0_2 = arith.constant 0 : index
    %c0_3 = arith.constant 0 : index
    %4 = vector.load %arg2[%c0_2, %c0_3] : memref<128x128xbf16, #tpu.memory_space<vmem>>, vector<128x128xbf16>
    %c0_4 = arith.constant 0 : index
    %c0_5 = arith.constant 0 : index
    %5 = vector.load %arg3[%c0_4, %c0_5] : memref<128x128xbf16, #tpu.memory_space<vmem>>, vector<128x128xbf16>
    %c0_6 = arith.constant 0 : index
    %c0_7 = arith.constant 0 : index
    %6 = vector.load %arg4[%c0_6, %c0_7] : memref<1x128xf32, #tpu.memory_space<vmem>>, vector<1x128xf32>
    %c0_8 = arith.constant 0 : index
    %c0_9 = arith.constant 0 : index
    %7 = vector.load %arg6[%c0_8, %c0_9] : memref<8x128xf32, #tpu.memory_space<vmem>>, vector<8x128xf32>
    %8 = arith.truncf %7 : vector<8x128xf32> to vector<8x128xbf16>
    %cst = arith.constant dense<0.000000e+00> : vector<8x128xf32>
    %9 = tpu.matmul %8, %4, %cst {dimension_numbers = #tpu.dot_dimension_numbers<[1], [0], [0], [1], [0, 0, 1, 1], [], []>} : vector<8x128xbf16>, vector<128x128xbf16>, vector<8x128xf32> -> vector<8x128xf32>
    %10 = arith.addf %3, %9 : vector<8x128xf32>
    %11 = math.tanh %10 : vector<8x128xf32>
    %12 = arith.truncf %11 : vector<8x128xf32> to vector<8x128xbf16>
    %cst_10 = arith.constant dense<0.000000e+00> : vector<8x128xf32>
    %13 = tpu.matmul %12, %5, %cst_10 {dimension_numbers = #tpu.dot_dimension_numbers<[1], [0], [0], [1], [0, 0, 1, 1], [], []>} : vector<8x128xbf16>, vector<128x128xbf16>, vector<8x128xf32> -> vector<8x128xf32>
    %14 = vector.broadcast %6 : vector<1x128xf32> to vector<8x128xf32>
    %15 = arith.addf %13, %14 : vector<8x128xf32>
    %c0_11 = arith.constant 0 : index
    %c0_12 = arith.constant 0 : index
    %16 = vector.load %arg5[%c0_11, %c0_12] : memref<8x512xf32, #tpu.memory_space<vmem>>, vector<8x128xf32>
    tpu.vector_store %arg5[%c0_11, %c0_12], %15 {strides = array<i32>} : memref<8x512xf32, #tpu.memory_space<vmem>>, vector<8x128xf32>,
    %17 = arith.truncf %11 : vector<8x128xf32> to vector<8x128xbf16>
    %cst_13 = arith.constant dense<0.000000e+00> : vector<8x128xf32>
    %18 = tpu.matmul %17, %4, %cst_13 {dimension_numbers = #tpu.dot_dimension_numbers<[1], [0], [0], [1], [0, 0, 1, 1], [], []>} : vector<8x128xbf16>, vector<128x128xbf16>, vector<8x128xf32> -> vector<8x128xf32>
    %19 = arith.addf %3, %18 : vector<8x128xf32>
    %20 = math.tanh %19 : vector<8x128xf32>
    %21 = arith.truncf %20 : vector<8x128xf32> to vector<8x128xbf16>
    %cst_14 = arith.constant dense<0.000000e+00> : vector<8x128xf32>
    %22 = tpu.matmul %21, %5, %cst_14 {dimension_numbers = #tpu.dot_dimension_numbers<[1], [0], [0], [1], [0, 0, 1, 1], [], []>} : vector<8x128xbf16>, vector<128x128xbf16>, vector<8x128xf32> -> vector<8x128xf32>
    %23 = vector.broadcast %6 : vector<1x128xf32> to vector<8x128xf32>
    %24 = arith.addf %22, %23 : vector<8x128xf32>
    %c0_15 = arith.constant 0 : index
    %c128 = arith.constant 128 : index
    %25 = vector.load %arg5[%c0_15, %c128] : memref<8x512xf32, #tpu.memory_space<vmem>>, vector<8x128xf32>
    tpu.vector_store %arg5[%c0_15, %c128], %24 {strides = array<i32>} : memref<8x512xf32, #tpu.memory_space<vmem>>, vector<8x128xf32>,
    %26 = arith.truncf %20 : vector<8x128xf32> to vector<8x128xbf16>
    %cst_16 = arith.constant dense<0.000000e+00> : vector<8x128xf32>
    %27 = tpu.matmul %26, %4, %cst_16 {dimension_numbers = #tpu.dot_dimension_numbers<[1], [0], [0], [1], [0, 0, 1, 1], [], []>} : vector<8x128xbf16>, vector<128x128xbf16>, vector<8x128xf32> -> vector<8x128xf32>
    %28 = arith.addf %3, %27 : vector<8x128xf32>
    %29 = math.tanh %28 : vector<8x128xf32>
    %30 = arith.truncf %29 : vector<8x128xf32> to vector<8x128xbf16>
    %cst_17 = arith.constant dense<0.000000e+00> : vector<8x128xf32>
    %31 = tpu.matmul %30, %5, %cst_17 {dimension_numbers = #tpu.dot_dimension_numbers<[1], [0], [0], [1], [0, 0, 1, 1], [], []>} : vector<8x128xbf16>, vector<128x128xbf16>, vector<8x128xf32> -> vector<8x128xf32>
    %32 = vector.broadcast %6 : vector<1x128xf32> to vector<8x128xf32>
    %33 = arith.addf %31, %32 : vector<8x128xf32>
    %c0_18 = arith.constant 0 : index
    %c256 = arith.constant 256 : index
    %34 = vector.load %arg5[%c0_18, %c256] : memref<8x512xf32, #tpu.memory_space<vmem>>, vector<8x128xf32>
    tpu.vector_store %arg5[%c0_18, %c256], %33 {strides = array<i32>} : memref<8x512xf32, #tpu.memory_space<vmem>>, vector<8x128xf32>,
    %35 = arith.truncf %29 : vector<8x128xf32> to vector<8x128xbf16>
    %cst_19 = arith.constant dense<0.000000e+00> : vector<8x128xf32>
    %36 = tpu.matmul %35, %4, %cst_19 {dimension_numbers = #tpu.dot_dimension_numbers<[1], [0], [0], [1], [0, 0, 1, 1], [], []>} : vector<8x128xbf16>, vector<128x128xbf16>, vector<8x128xf32> -> vector<8x128xf32>
    %37 = arith.addf %3, %36 : vector<8x128xf32>
    %38 = math.tanh %37 : vector<8x128xf32>
    %39 = arith.truncf %38 : vector<8x128xf32> to vector<8x128xbf16>
    %cst_20 = arith.constant dense<0.000000e+00> : vector<8x128xf32>
    %40 = tpu.matmul %39, %5, %cst_20 {dimension_numbers = #tpu.dot_dimension_numbers<[1], [0], [0], [1], [0, 0, 1, 1], [], []>} : vector<8x128xbf16>, vector<128x128xbf16>, vector<8x128xf32> -> vector<8x128xf32>
    %41 = vector.broadcast %6 : vector<1x128xf32> to vector<8x128xf32>
    %42 = arith.addf %40, %41 : vector<8x128xf32>
    %c0_21 = arith.constant 0 : index
    %c384 = arith.constant 384 : index
    %43 = vector.load %arg5[%c0_21, %c384] : memref<8x512xf32, #tpu.memory_space<vmem>>, vector<8x128xf32>
    tpu.vector_store %arg5[%c0_21, %c384], %42 {strides = array<i32>} : memref<8x512xf32, #tpu.memory_space<vmem>>, vector<8x128xf32>,
    %c0_22 = arith.constant 0 : index
    %c0_23 = arith.constant 0 : index
    %44 = vector.load %arg6[%c0_22, %c0_23] : memref<8x128xf32, #tpu.memory_space<vmem>>, vector<8x128xf32>
    tpu.vector_store %arg6[%c0_22, %c0_23], %38 {strides = array<i32>} : memref<8x128xf32, #tpu.memory_space<vmem>>, vector<8x128xf32>,
    return
  }
  func.func @transform_0(%arg0: i32) -> (i32, i32) {
    %c0_i32 = arith.constant 0 : i32
    %c0_i32_0 = arith.constant 0 : i32
    %c0_i32_1 = arith.constant 0 : i32
    return %c0_i32, %c0_i32_0 : i32, i32
  }
  func.func @transform_1(%arg0: i32) -> (i32, i32) {
    %c0_i32 = arith.constant 0 : i32
    %c0_i32_0 = arith.constant 0 : i32
    %c0_i32_1 = arith.constant 0 : i32
    return %c0_i32, %c0_i32_0 : i32, i32
  }
  func.func @transform_2(%arg0: i32) -> (i32, i32) {
    %c0_i32 = arith.constant 0 : i32
    %c0_i32_0 = arith.constant 0 : i32
    %c0_i32_1 = arith.constant 0 : i32
    return %c0_i32, %c0_i32_0 : i32, i32
  }
  func.func @transform_3(%arg0: i32) -> (i32, i32) {
    %c0_i32 = arith.constant 0 : i32
    %c0_i32_0 = arith.constant 0 : i32
    %c0_i32_1 = arith.constant 0 : i32
    return %c0_i32, %c0_i32_0 : i32, i32
  }
  func.func @transform_4(%arg0: i32) -> (i32, i32) {
    %c0_i32 = arith.constant 0 : i32
    %c0_i32_0 = arith.constant 0 : i32
    return %c0_i32, %arg0 : i32, i32
  }
}

</mosaic_0001>

<bundles_post_ra>
// kernel: tpu_custom_call.1
= control target key start
LH: loop header
LB: loop body
LE: loop exit
PB: predicated region body
PF: predicated region fallthrough
CT: control target
= control target key end

     0   :  { %9 = vsyncpa [#allocation4], 0  ;;  %s1754_s0 = inlined_call_operand.hbm [shape: f32[8,128], index: 0, kind: input, shape index: {}]   ;;  %s1755_s1 = inlined_call_operand.hbm [shape: bf16[128,128], index: 1, kind: input, shape index: {}]   ;;  %s1756_s2 = inlined_call_operand.hbm [shape: bf16[128,128], index: 2, kind: input, shape index: {}]   ;;  %s1757_s3 = inlined_call_operand.vmem [shape: f32[1,128], index: 3, kind: input, shape index: {}]   ;;  %s1758_s4 = inlined_call_operand.hbm [shape: f32[8,1024], index: 4, kind: output, shape index: {}]  }
   0x1   :  { %10 = vsyncpa [#allocation7], 0 }
   0x2   :  { %11 = vsyncpa [#allocation5], 0 }
   0x3   :  { %13 = vsyncpa [#allocation5 + $0x1], 0  ;;  %s1348_s15 = smov 0   ;;  %s1350_s16 = smov 0  }
   0x4   :  { %s1352_s17 = smov 0   ;;  %s1354_s18 = smov 0  }
   0x5 LB: > { %s1369_s19 = sadd.s32 4294967295, %s1312_s18   ;;  %s793_s20 = sadd.s32 4294967294, %s1312_s18   ;;  %s1312_s18 = sphi %s1354_s18, %s1778_s18   ;;  %s1308_s17 = sphi %s1352_s17, %s1777_s17   ;;  %s1304_s16 = sphi %s1350_s16, %s1776_s16   ;;  %s1300_s15 = sphi %s1348_s15, %s1775_s15  }
   0x6   : > { %s1373_s21 = sadd.s32 1, %s1312_s18   ;;  %s110_s22 = sadd.s32 1, %s1308_s17 }
   0x7   : > { %s107_s23 = ssub.s32 %s1312_s18, %s1373_s21  ;;  %p120_p0 = scmp.ne.s32.totalorder %s1308_s17, %s1304_s16 }
   0x8   : > { %p108_p1 = scmp.eq.s32.totalorder %s107_s23, 0  ;;  %p121_p2 = scmp.eq.s32.totalorder %s1369_s19, 1 }
   0x9   : > { %p126_p3 = scmp.ne.s32.totalorder %s1304_s16, %s1300_s15  ;;  %p127_p4 = scmp.eq.s32.totalorder %s793_s20, 1 }
   0xa   : > { %s1384_s24 = scalar_select %p108_p1, %s1308_s17, %s110_s22  }
   0xb   : > { %p1386_p5 = por %p121_p2, %p120_p0  ;;  %p1390_p6 = por %p127_p4, %p126_p3 }
   0xc   : > { %p794_p7 = scmp.ge.s32.totalorder %s1312_s18, 1  ;;  %p134_p8 = scmp.lt.s32.totalorder %s1312_s18, 3 }
   0xd   : > { %s1762_s25 = scalar_select %p1386_p5, 1, 0 }
   0xe   : > { %s1763_s26 = scalar_select %p1390_p6, 1, 0 }
   0xf   : > { %p1759_p10 = scmp.eq.s32.totalorder %s1369_s19, 0  ;;  %p1398_p11 = pnand %p794_p7, %p134_p8 }
  0x10   : > { %s1314_s28 = smov [#allocation6]   ;;  %s1315_s5 = smov [#allocation3]  }
  0x11   : > { %s1764_s27 = scalar_select %p1398_p11, 1, 0 }
  0x12   : > { %s157_s29 = sshll.u32 %s1314_s28, 4  ;;  %p1073_p12 = pneg %p1398_p11  ;;  %s1404_s29 = int_to_ptr.vmem [resolvable:$true] %s157_s29 }
  0x13   : > { %s147_s6 = sshll.u32 %s1315_s5, 4  ;;  %s1316_s7 = smov [#allocation8]   ;;  %s1412_s6 = int_to_ptr.vmem [resolvable:$true] %s147_s6 }
  0x14   : > { %p1408_p13 = pnand %p1759_p10, %p1073_p12  ;;  %s1414_s8 = sshll.u32 %s1316_s7, 4  ;;  %s171_s8 = int_to_ptr.vmem [resolvable:$true] %s1414_s8 }
  0x15   : > { %s1158_s11 = scalar_lea.hbm %s1755_s1, 1024 }
  0x16   : > { %p1159_p0 = scmp.ne.s32.totalorder %s1755_s1, %s1158_s11  ;;  %p1424_p1 = pneg %p1408_p13 }
  0x17   : > { %p1165_p4 = scmp.lt.u32.totalorder %s1158_s11, %s1755_s1 }
  0x18   : > { %p1161_p2 = pnand %p1424_p1, %p1159_p0 }
  0x1a   : > { %p1162_p3 = pneg %p1161_p2 }
  0x1c   : > { %p1167_p7 = pnand %p1165_p4, %p1162_p3 }
  0x1e   : > { %1170 = shalt.err (!%p1167_p7)
}
  0x1f   : > { %s1171_s23 = scalar_lea.vmem %s1404_s29, 1024  ;;  %p1179_p10 = scmp.lt.s32.totalorder %s1404_s29, %s1404_s29 }
  0x20   : > { %p1172_p8 = scmp.ne.s32.totalorder %s1404_s29, %s1171_s23  ;;  %p1180_p6 = scmp.lt.s32.totalorder %s1171_s23, %s1171_s23 }
  0x22   : > { %p1174_p12 = pnand %p1172_p8, %p1424_p1  ;;  %p1181_p0 = por %p1180_p6, %p1179_p10 }
  0x24   : > { %p1175_p9 = pneg %p1174_p12 }
  0x26   : > { %p1182_p2 = pnand %p1181_p0, %p1175_p9 }
  0x28   : > { %1185 = shalt.err (!%p1182_p2)
}
  0x29   : > { %s1317_s28 = smov 64   ;;  %s1318_s5 = smov 4  }
  0x2a   : > { %1079 = dma.hbm_to_vmem [thread:$0]  (!%p1408_p13), %s1755_s1, 1024, %s1404_s29, [#allocation7], %s1317_s28, %s1317_s28, %s1318_s5  }
  0x2b   : > { %s1186_s12 = scalar_lea.hbm %s1754_s0, 128 }
  0x2c   : > { %p1187_p6 = scmp.ne.s32.totalorder %s1754_s0, %s1186_s12  ;;  %p1193_p3 = scmp.lt.u32.totalorder %s1186_s12, %s1754_s0 }
  0x2e   : > { %p1189_p9 = pnand %p1187_p6, %p1424_p1 }
  0x30   : > { %p1190_p10 = pneg %p1189_p9 }
  0x32   : > { %p1195_p4 = pnand %p1193_p3, %p1190_p10 }
  0x34   : > { %1198 = shalt.err (!%p1195_p4)
}
  0x35   : > { %s1199_s29 = scalar_lea.vmem %s1412_s6, 128  ;;  %p1207_p0 = scmp.lt.s32.totalorder %s1412_s6, %s1412_s6 }
  0x36   : > { %p1200_p7 = scmp.ne.s32.totalorder %s1412_s6, %s1199_s29  ;;  %p1208_p2 = scmp.lt.s32.totalorder %s1199_s29, %s1199_s29 }
  0x38   : > { %p1202_p8 = pnand %p1200_p7, %p1424_p1  ;;  %p1209_p6 = por %p1208_p2, %p1207_p0 }
  0x3a   : > { %p1203_p12 = pneg %p1202_p8 }
  0x3c   : > { %p1210_p9 = pnand %p1209_p6, %p1203_p12 }
  0x3e   : > { %1213 = shalt.err (!%p1210_p9)
}
  0x3f   : > { %1076 = dma.hbm_to_vmem [thread:$0]  (!%p1408_p13), %s1754_s0, 128, %s1412_s6, [#allocation4]  }
  0x40   : > { %s1214_s12 = scalar_lea.hbm %s1756_s2, 1024 }
  0x41   : > { %p1215_p10 = scmp.ne.s32.totalorder %s1756_s2, %s1214_s12  ;;  %p1221_p7 = scmp.lt.u32.totalorder %s1214_s12, %s1756_s2 }
  0x43   : > { %p1217_p3 = pnand %p1215_p10, %p1424_p1 }
  0x45   : > { %p1218_p4 = pneg %p1217_p3 }
  0x47   : > { %p1223_p8 = pnand %p1221_p7, %p1218_p4 }
  0x49   : > { %1226 = shalt.err (!%p1223_p8)
}
  0x4a   : > { %s1227_s29 = scalar_lea.vmem %s171_s8, 1024  ;;  %p1235_p6 = scmp.lt.s32.totalorder %s171_s8, %s171_s8 }
  0x4b   : > { %p1228_p12 = scmp.ne.s32.totalorder %s171_s8, %s1227_s29  ;;  %p1236_p9 = scmp.lt.s32.totalorder %s1227_s29, %s1227_s29 }
  0x4d   : > { %p1230_p0 = pnand %p1228_p12, %p1424_p1  ;;  %p1237_p5 = por %p1236_p9, %p1235_p6 }
  0x4f   : > { %p1231_p2 = pneg %p1230_p0 }
  0x51   : > { %p1238_p11 = pnand %p1237_p5, %p1231_p2 }
  0x53   : > { %1241 = shalt.err (!%p1238_p11)
}
  0x54   : > { %1082 = dma.hbm_to_vmem [thread:$0]  (!%p1408_p13), %s1756_s2, 1024, %s171_s8, [#allocation7], %s1317_s28, %s1317_s28, %s1318_s5  }
  0x55   : > { %p1767_p10 = scmp.ne.s32.totalorder %s1764_s27, 0 }
  0x56   : > { %p1768_p1 = scmp.eq.s32.totalorder (!%p1767_p10), %s1369_s19, 0 }
  0x57   : > { %189 = sbr.rel (%p1767_p10) target bundleno = 1276 (0x4fc), region = 36 }
  0x5e   : > { %1287 = dma.done.wait (%p1768_p1), [#allocation4], 128   ;;  %p1769_p3 = pmov %p1768_p1 }
  0x5f   : > { %p1770_p5 = pmov %p1768_p1 }
  0x60   : > { %1289 = vsyncadd (%p1769_p3), [#allocation4], 4294967168 }
  0x61   : > { %1291 = dma.done.wait (%p1770_p5), [#allocation7], 2048   ;;  %p1771_p11 = pmov %p1768_p1 }
  0x62   : > { %s215_s30 = sand.u32 1, %s1304_s16   ;;  %p1772_p13 = scmp.ne.s32.totalorder %s1369_s19, 0 }
  0x63   : > { %1293 = vsyncadd (%p1771_p11), [#allocation7], 4294965248  ;;  %s802_s8 = sshll.u32 %s215_s30, 5  ;;  %v1319_v0 = vmov (!%p1772_p13), 0.0  }
  0x64   : > { %s1506_s14 = scalar_lea.vmem [#allocation9], %s802_s8  ;;  %223 = sbr.rel (%p1772_p13) target bundleno = 107 (0x6b), region = 52  ;;  %224 = vst [vmem:[#allocation2] sm:$0xff] (!%p1772_p13), %v1319_v0 }
  0x6b PF: > { %v1510_v1 = vld [vmem:[#allocation6] sm:$0xff]   ;;  %v1320_v2 = vmov 0.0   ;;  %v1515_v3 = vld [vmem:[#allocation6 + $0x8] sm:$0xff]   ;;  %vm1321_vm0 = vmmov 0   ;;  %v1523_v4 = vld [vmem:[#allocation6 + $0x10] sm:$0xff]   ;;  %s826_s5 = sshll.u32 %s1369_s19, 9 }
  0x6c   : > { %899 = vmatprep.subr.bf16.mxu0 %v1320_v2  ;;  %919 = vmatprep.subr.bf16.mxu1 %v1320_v2  ;;  %v1526_v5 = vld [vmem:[#allocation8] sm:$0xff]   ;;  %v1529_v6 = vld [vmem:[#allocation6 + $0x18] sm:$0xff]   ;;  %v1533_v7 = vld [vmem:[#allocation8 + $0x8] sm:$0xff]   ;;  %s715_s9 = sshll.u32 %s1506_s14, 4  ;;  %s1709_s12 = scalar_lea.hbm %s1758_s4, %s826_s5  ;;  %s1711_s9 = int_to_ptr.vmem [resolvable:$true] %s715_s9 }
  0x6d   : > { %900 = vmatpush3.bf16.msra.mxu0 %v1510_v1  ;;  %915 = vmatprep.mubr.msk.bf16.mxu0 %vm1321_vm0, %v1320_v2  ;;  %v1535_v8 = vld [vmem:[#allocation6 + $0x20] sm:$0xff]   ;;  %v1541_v9 = vld [vmem:[#allocation8 + $0x10] sm:$0xff]   ;;  %v1545_v10 = vld [vmem:[#allocation6 + $0x28] sm:$0xff]   ;;  %s701_s19 = scalar_lea.sflag [#allocation5], %s215_s30  ;;  %s1242_s13 = scalar_lea.vmem %s1711_s9, 512 }
  0x6e   : > { %901 = vmatprep.subr.bf16.mxu0 %v1320_v2  ;;  %935 = vmatprep.mubr.msk.bf16.mxu1 %vm1321_vm0, %v1320_v2  ;;  %v1549_v11 = vld [vmem:[#allocation8 + $0x18] sm:$0xff]   ;;  %v1553_v12 = vld [vmem:[#allocation6 + $0x30] sm:$0xff]   ;;  %v1582_v16 = vld [vmem:[#allocation8 + $0x20] sm:$0xff]   ;;  %p1243_p4 = scmp.ne.s32.totalorder %s1711_s9, %s1242_s13  ;;  %p1773_p7 = scmp.ne.s32.totalorder %s1762_s25, 0 }
  0x6f   : > { %920 = vmatpush3.bf16.msra.mxu1 %v1526_v5  ;;  %v1559_v13 = vld [vmem:[#allocation6 + $0x38] sm:$0xff]   ;;  %v259_v14 = vld [vmem:[#allocation2] sm:$0xff]  ;;  %v1586_v17 = vld [vmem:[#allocation8 + $0x28] sm:$0xff]   ;;  %s1322_s20 = smov [#allocation9]  }
  0x70   : > { %921 = vmatprep.subr.bf16.mxu1 %v1320_v2  ;;  %v260_v15 = vpack.c.bf16 %v259_v14, %v259_v14  ;;  %v1590_v18 = vld [vmem:[#allocation8 + $0x30] sm:$0xff]   ;;  %v1594_v19 = vld [vmem:[#allocation8 + $0x38] sm:$0xff]   ;;  %p1244_p8 = pnand %p1243_p4, %p1773_p7  ;;  %s1246_s22 = sshll.u32 %s1322_s20, 4  ;;  %s1247_s22 = int_to_ptr.vmem [resolvable:$false] %s1246_s22 }
  0x71   : > { %902 = vmatpush3.bf16.msra.mxu0 %v1515_v3  ;;  %v1598_v20 = vld [vmem:[#allocation3] sm:$0xff]  ;;  %v1640_v28 = vld [vmem:[%s1757_s3] ss:$0 sm:$0xff]  ;;  %s1248_s23 = scalar_lea.vmem %s1247_s22, 1024  ;;  %p1249_p0 = scmp.lt.s32.totalorder %s1711_s9, %s1247_s22 }
  0x72   : > { %903 = vmatprep.subr.bf16.mxu0 %v1320_v2  ;;  %p1245_p12 = pneg %p1244_p8  ;;  %p1250_p2 = scmp.lt.s32.totalorder %s1248_s23, %s1242_s13 }
  0x73   : > { %922 = vmatpush3.bf16.msra.mxu1 %v1533_v7 }
  0x74   : > { %923 = vmatprep.subr.bf16.mxu1 %v1320_v2  ;;  %p1251_p6 = por %p1250_p2, %p1249_p0 }
  0x75   : > { %904 = vmatpush3.bf16.msra.mxu0 %v1523_v4 }
  0x76   : > { %905 = vmatprep.subr.bf16.mxu0 %v1320_v2  ;;  %p1252_p9 = pnand %p1251_p6, %p1245_p12 }
  0x77   : > { %924 = vmatpush3.bf16.msra.mxu1 %v1541_v9 }
  0x78   : > { %925 = vmatprep.subr.bf16.mxu1 %v1320_v2 }
  0x79   : > { %906 = vmatpush3.bf16.msra.mxu0 %v1529_v6 }
  0x7a   : > { %907 = vmatprep.subr.bf16.mxu0 %v1320_v2 }
  0x7b   : > { %926 = vmatpush3.bf16.msra.mxu1 %v1549_v11 }
  0x7c   : > { %927 = vmatprep.subr.bf16.mxu1 %v1320_v2 }
  0x7d   : > { %908 = vmatpush3.bf16.msra.mxu0 %v1535_v8 }
  0x7e   : > { %909 = vmatprep.subr.bf16.mxu0 %v1320_v2 }
  0x7f   : > { %928 = vmatpush3.bf16.msra.mxu1 %v1582_v16 }
  0x80   : > { %929 = vmatprep.subr.bf16.mxu1 %v1320_v2 }
  0x81   : > { %910 = vmatpush3.bf16.msra.mxu0 %v1545_v10 }
  0x82   : > { %911 = vmatprep.subr.bf16.mxu0 %v1320_v2 }
  0x83   : > { %930 = vmatpush3.bf16.msra.mxu1 %v1586_v17 }
  0x84   : > { %931 = vmatprep.subr.bf16.mxu1 %v1320_v2 }
  0x85   : > { %912 = vmatpush3.bf16.msra.mxu0 %v1553_v12 }
  0x86   : > { %913 = vmatprep.subr.bf16.mxu0 %v1320_v2 }
  0x87   : > { %932 = vmatpush3.bf16.msra.mxu1 %v1590_v18 }
  0x88   : > { %933 = vmatprep.subr.bf16.mxu1 %v1320_v2 }
  0x89   : > { %914 = vmatpush3.bf16.msra.mxu0 %v1559_v13 }
  0x8a   : > { %939 = vmatprep.subr.bf16.mxu0 %v1320_v2 }
  0x8b   : > { %934 = vmatpush3.bf16.msra.mxu1 %v1594_v19 }
  0x8c   : > { %916 = vmatmul.mubr.bf16.vlgmr.msra.gmra.mrb[0].mxu0 %v260_v15  ;;  %959 = vmatprep.subr.bf16.mxu1 %v1320_v2 }
  0x8d   : > { %940 = vmatpush3.bf16.msra.mxu0 %v1510_v1  ;;  %955 = vmatprep.mubr.msk.bf16.mxu0 %vm1321_vm0, %v1320_v2 }
  0x8e   : > { %941 = vmatprep.subr.bf16.mxu0 %v1320_v2 }
  0x91   : > { %942 = vmatpush3.bf16.msra.mxu0 %v1515_v3 }
  0x92   : > { %943 = vmatprep.subr.bf16.mxu0 %v1320_v2 }
  0x95   : > { %944 = vmatpush3.bf16.msra.mxu0 %v1523_v4 }
  0x96   : > { %945 = vmatprep.subr.bf16.mxu0 %v1320_v2 }
  0x99   : > { %946 = vmatpush3.bf16.msra.mxu0 %v1529_v6 }
  0x9a   : > { %947 = vmatprep.subr.bf16.mxu0 %v1320_v2 }
  0x9d   : > { %948 = vmatpush3.bf16.msra.mxu0 %v1535_v8 }
  0x9e   : > { %949 = vmatprep.subr.bf16.mxu0 %v1320_v2 }
  0xa1   : > { %950 = vmatpush3.bf16.msra.mxu0 %v1545_v10 }
  0xa2   : > { %951 = vmatprep.subr.bf16.mxu0 %v1320_v2 }
  0xa5   : > { %952 = vmatpush3.bf16.msra.mxu0 %v1553_v12 }
  0xa6   : > { %953 = vmatprep.subr.bf16.mxu0 %v1320_v2 }
  0xa9   : > { %954 = vmatpush3.bf16.msra.mxu0 %v1559_v13 }
  0xaa   : > { %979 = vmatprep.subr.bf16.mxu0 %v1320_v2 }
 0x15f   : > { %v343_v21 = vpop.f32.mrb[0].mxu0 }
 0x160   : > { %v349_v22 = vadd.f32 %v343_v21, %v1598_v20  ;;  %v917_v23 = vpop.f32.mrb[1].mxu0 }
 0x161   : > { %v346_v24 = vpop.f32.mrb[2].mxu0 }
 0x162   : > { %1150 = vtanh.f32 %v349_v22  ;;  %v918_v25 = vpop.f32.mrb[3].mxu0 }
 0x16c   : > { %v1151_v26 = vpop.eup %1150 }
 0x16d   : > { %v351_v27 = vpack.c.bf16 %v1151_v26, %v1151_v26 }
 0x16f   : > { %936 = vmatmul.mubr.bf16.vlgmr.msra.gmra.mrb[0].mxu1 %v351_v27  ;;  %956 = vmatmul.mubr.bf16.vlgmr.msra.gmra.mrb[4].mxu0 %v351_v27 }
 0x170   : > { %960 = vmatpush3.bf16.msra.mxu1 %v1526_v5  ;;  %980 = vmatpush3.bf16.msra.mxu0 %v1510_v1 }
 0x171   : > { %961 = vmatprep.subr.bf16.mxu1 %v1320_v2  ;;  %981 = vmatprep.subr.bf16.mxu0 %v1320_v2 }
 0x172   : > { %975 = vmatprep.mubr.msk.bf16.mxu1 %vm1321_vm0, %v1320_v2  ;;  %995 = vmatprep.mubr.msk.bf16.mxu0 %vm1321_vm0, %v1320_v2 }
 0x174   : > { %962 = vmatpush3.bf16.msra.mxu1 %v1533_v7  ;;  %982 = vmatpush3.bf16.msra.mxu0 %v1515_v3 }
 0x175   : > { %963 = vmatprep.subr.bf16.mxu1 %v1320_v2  ;;  %983 = vmatprep.subr.bf16.mxu0 %v1320_v2 }
 0x178   : > { %964 = vmatpush3.bf16.msra.mxu1 %v1541_v9  ;;  %984 = vmatpush3.bf16.msra.mxu0 %v1523_v4 }
 0x179   : > { %965 = vmatprep.subr.bf16.mxu1 %v1320_v2  ;;  %985 = vmatprep.subr.bf16.mxu0 %v1320_v2 }
 0x17c   : > { %966 = vmatpush3.bf16.msra.mxu1 %v1549_v11  ;;  %986 = vmatpush3.bf16.msra.mxu0 %v1529_v6 }
 0x17d   : > { %967 = vmatprep.subr.bf16.mxu1 %v1320_v2  ;;  %987 = vmatprep.subr.bf16.mxu0 %v1320_v2 }
 0x180   : > { %968 = vmatpush3.bf16.msra.mxu1 %v1582_v16  ;;  %988 = vmatpush3.bf16.msra.mxu0 %v1535_v8 }
 0x181   : > { %969 = vmatprep.subr.bf16.mxu1 %v1320_v2  ;;  %989 = vmatprep.subr.bf16.mxu0 %v1320_v2 }
 0x184   : > { %970 = vmatpush3.bf16.msra.mxu1 %v1586_v17  ;;  %990 = vmatpush3.bf16.msra.mxu0 %v1545_v10 }
 0x185   : > { %971 = vmatprep.subr.bf16.mxu1 %v1320_v2  ;;  %991 = vmatprep.subr.bf16.mxu0 %v1320_v2 }
 0x188   : > { %972 = vmatpush3.bf16.msra.mxu1 %v1590_v18  ;;  %992 = vmatpush3.bf16.msra.mxu0 %v1553_v12 }
 0x189   : > { %973 = vmatprep.subr.bf16.mxu1 %v1320_v2  ;;  %993 = vmatprep.subr.bf16.mxu0 %v1320_v2 }
 0x18c   : > { %974 = vmatpush3.bf16.msra.mxu1 %v1594_v19  ;;  %994 = vmatpush3.bf16.msra.mxu0 %v1559_v13 }
 0x18d   : > { %999 = vmatprep.subr.bf16.mxu1 %v1320_v2  ;;  %1019 = vmatprep.subr.bf16.mxu0 %v1320_v2 }
 0x242   : > { %v440_v29 = vpop.f32.mrb[0].mxu1  ;;  %v481_v30 = vpop.f32.mrb[4].mxu0 }
 0x243   : > { %v441_v31 = vadd.f32 %v1640_v28, %v440_v29  ;;  %v487_v32 = vadd.f32 %v481_v30, %v1598_v20  ;;  %v937_v33 = vpop.f32.mrb[1].mxu1  ;;  %v957_v34 = vpop.f32.mrb[5].mxu0 }
 0x244   : > { %v443_v35 = vpop.f32.mrb[2].mxu1  ;;  %v484_v36 = vpop.f32.mrb[6].mxu0 }
 0x245   : > { %446 = vst [vmem:[%s1506_s14] sm:$0xff] %v441_v31  ;;  %1152 = vtanh.f32 %v487_v32  ;;  %v938_v37 = vpop.f32.mrb[3].mxu1  ;;  %v958_v38 = vpop.f32.mrb[7].mxu0 }
 0x24f   : > { %v1153_v39 = vpop.eup %1152 }
 0x250   : > { %v489_v40 = vpack.c.bf16 %v1153_v39, %v1153_v39 }
 0x252   : > { %976 = vmatmul.mubr.bf16.vlgmr.msra.gmra.mrb[4].mxu1 %v489_v40  ;;  %996 = vmatmul.mubr.bf16.vlgmr.msra.gmra.mrb[8].mxu0 %v489_v40 }
 0x253   : > { %1000 = vmatpush3.bf16.msra.mxu1 %v1526_v5  ;;  %1020 = vmatpush3.bf16.msra.mxu0 %v1510_v1 }
 0x254   : > { %1001 = vmatprep.subr.bf16.mxu1 %v1320_v2  ;;  %1021 = vmatprep.subr.bf16.mxu0 %v1320_v2 }
 0x255   : > { %1015 = vmatprep.mubr.msk.bf16.mxu1 %vm1321_vm0, %v1320_v2  ;;  %1035 = vmatprep.mubr.msk.bf16.mxu0 %vm1321_vm0, %v1320_v2 }
 0x257   : > { %1002 = vmatpush3.bf16.msra.mxu1 %v1533_v7  ;;  %1022 = vmatpush3.bf16.msra.mxu0 %v1515_v3 }
 0x258   : > { %1003 = vmatprep.subr.bf16.mxu1 %v1320_v2  ;;  %1023 = vmatprep.subr.bf16.mxu0 %v1320_v2 }
 0x25b   : > { %1004 = vmatpush3.bf16.msra.mxu1 %v1541_v9  ;;  %1024 = vmatpush3.bf16.msra.mxu0 %v1523_v4 }
 0x25c   : > { %1005 = vmatprep.subr.bf16.mxu1 %v1320_v2  ;;  %1025 = vmatprep.subr.bf16.mxu0 %v1320_v2 }
 0x25f   : > { %1006 = vmatpush3.bf16.msra.mxu1 %v1549_v11  ;;  %1026 = vmatpush3.bf16.msra.mxu0 %v1529_v6 }
 0x260   : > { %1007 = vmatprep.subr.bf16.mxu1 %v1320_v2  ;;  %1027 = vmatprep.subr.bf16.mxu0 %v1320_v2 }
 0x263   : > { %1008 = vmatpush3.bf16.msra.mxu1 %v1582_v16  ;;  %1028 = vmatpush3.bf16.msra.mxu0 %v1535_v8 }
 0x264   : > { %1009 = vmatprep.subr.bf16.mxu1 %v1320_v2  ;;  %1029 = vmatprep.subr.bf16.mxu0 %v1320_v2 }
 0x267   : > { %1010 = vmatpush3.bf16.msra.mxu1 %v1586_v17  ;;  %1030 = vmatpush3.bf16.msra.mxu0 %v1545_v10 }
 0x268   : > { %1011 = vmatprep.subr.bf16.mxu1 %v1320_v2  ;;  %1031 = vmatprep.subr.bf16.mxu0 %v1320_v2 }
 0x26b   : > { %1012 = vmatpush3.bf16.msra.mxu1 %v1590_v18  ;;  %1032 = vmatpush3.bf16.msra.mxu0 %v1553_v12 }
 0x26c   : > { %1013 = vmatprep.subr.bf16.mxu1 %v1320_v2  ;;  %1033 = vmatprep.subr.bf16.mxu0 %v1320_v2 }
 0x26f   : > { %1014 = vmatpush3.bf16.msra.mxu1 %v1594_v19  ;;  %1034 = vmatpush3.bf16.msra.mxu0 %v1559_v13 }
 0x270   : > { %1039 = vmatprep.subr.bf16.mxu1 %v1320_v2 }
 0x325   : > { %v524_v41 = vpop.f32.mrb[4].mxu1  ;;  %v565_v42 = vpop.f32.mrb[8].mxu0 }
 0x326   : > { %v525_v43 = vadd.f32 %v1640_v28, %v524_v41  ;;  %v571_v44 = vadd.f32 %v565_v42, %v1598_v20  ;;  %v977_v45 = vpop.f32.mrb[5].mxu1  ;;  %v997_v46 = vpop.f32.mrb[9].mxu0 }
 0x327   : > { %v527_v47 = vpop.f32.mrb[6].mxu1  ;;  %v568_v48 = vpop.f32.mrb[10].mxu0 }
 0x328   : > { %530 = vst [vmem:[%s1506_s14 + $0x8] sm:$0xff] %v525_v43  ;;  %1154 = vtanh.f32 %v571_v44  ;;  %v978_v49 = vpop.f32.mrb[7].mxu1  ;;  %v998_v50 = vpop.f32.mrb[11].mxu0 }
 0x332   : > { %v1155_v51 = vpop.eup %1154 }
 0x333   : > { %v573_v52 = vpack.c.bf16 %v1155_v51, %v1155_v51 }
 0x335   : > { %1016 = vmatmul.mubr.bf16.vlgmr.msra.gmra.mrb[8].mxu1 %v573_v52  ;;  %1036 = vmatmul.mubr.bf16.vlgmr.msra.gmra.mrb[12].mxu0 %v573_v52 }
 0x336   : > { %1040 = vmatpush3.bf16.msra.mxu1 %v1526_v5  ;;  %1055 = vmatprep.mubr.msk.bf16.mxu1 %vm1321_vm0, %v1320_v2 }
 0x337   : > { %1041 = vmatprep.subr.bf16.mxu1 %v1320_v2 }
 0x33a   : > { %1042 = vmatpush3.bf16.msra.mxu1 %v1533_v7 }
 0x33b   : > { %1043 = vmatprep.subr.bf16.mxu1 %v1320_v2 }
 0x33e   : > { %1044 = vmatpush3.bf16.msra.mxu1 %v1541_v9 }
 0x33f   : > { %1045 = vmatprep.subr.bf16.mxu1 %v1320_v2 }
 0x342   : > { %1046 = vmatpush3.bf16.msra.mxu1 %v1549_v11 }
 0x343   : > { %1047 = vmatprep.subr.bf16.mxu1 %v1320_v2 }
 0x346   : > { %1048 = vmatpush3.bf16.msra.mxu1 %v1582_v16 }
 0x347   : > { %1049 = vmatprep.subr.bf16.mxu1 %v1320_v2 }
 0x34a   : > { %1050 = vmatpush3.bf16.msra.mxu1 %v1586_v17 }
 0x34b   : > { %1051 = vmatprep.subr.bf16.mxu1 %v1320_v2 }
 0x34e   : > { %1052 = vmatpush3.bf16.msra.mxu1 %v1590_v18 }
 0x34f   : > { %1053 = vmatprep.subr.bf16.mxu1 %v1320_v2 }
 0x352   : > { %1054 = vmatpush3.bf16.msra.mxu1 %v1594_v19 }
 0x408   : > { %v608_v53 = vpop.f32.mrb[8].mxu1  ;;  %v649_v54 = vpop.f32.mrb[12].mxu0 }
 0x409   : > { %v609_v55 = vadd.f32 %v1640_v28, %v608_v53  ;;  %v655_v56 = vadd.f32 %v649_v54, %v1598_v20  ;;  %v1017_v57 = vpop.f32.mrb[9].mxu1  ;;  %v1037_v58 = vpop.f32.mrb[13].mxu0 }
 0x40a   : > { %v611_v59 = vpop.f32.mrb[10].mxu1  ;;  %v652_v60 = vpop.f32.mrb[14].mxu0 }
 0x40b   : > { %614 = vst [vmem:[%s1506_s14 + $0x10] sm:$0xff] %v609_v55  ;;  %1156 = vtanh.f32 %v655_v56  ;;  %v1018_v61 = vpop.f32.mrb[11].mxu1  ;;  %v1038_v62 = vpop.f32.mrb[15].mxu0 }
 0x415   : > { %v1157_v63 = vpop.eup %1156 }
 0x416   : > { %699 = vst [vmem:[#allocation2] sm:$0xff] %v1157_v63  ;;  %v657_v0 = vpack.c.bf16 %v1157_v63, %v1157_v63 }
 0x418   : > { %1056 = vmatmul.mubr.bf16.vlgmr.msra.gmra.mrb[12].mxu1 %v657_v0 }
 0x4eb   : > { %v692_v1 = vpop.f32.mrb[12].mxu1 }
 0x4ec   : > { %v693_v2 = vadd.f32 %v1640_v28, %v692_v1  ;;  %v1057_v3 = vpop.f32.mrb[13].mxu1 }
 0x4ed   : > { %v695_v4 = vpop.f32.mrb[14].mxu1 }
 0x4ee   : > { %698 = vst [vmem:[%s1506_s14 + $0x18] sm:$0xff] %v693_v2  ;;  %v1058_v5 = vpop.f32.mrb[15].mxu1 }
 0x4ef   : > { %1255 = shalt.err (!%p1252_p9)
}
 0x4f0   : > { %s1256_s29 = scalar_lea.hbm %s1709_s12, 512  ;;  %s1260_s30 = scalar_lea.hbm %s1758_s4, 1024 }
 0x4f1   : > { %p1257_p10 = scmp.ne.s32.totalorder %s1709_s12, %s1256_s29  ;;  %p1261_p5 = scmp.lt.u32.totalorder %s1709_s12, %s1758_s4 }
 0x4f2   : > { %p1262_p11 = scmp.lt.u32.totalorder %s1260_s30, %s1256_s29  ;;  %p1264_p4 = scmp.lt.u32.totalorder %s1256_s29, %s1709_s12 }
 0x4f3   : > { %p1258_p1 = pnand %p1257_p10, %p1773_p7 }
 0x4f4   : > { %p1263_p13 = por %p1262_p11, %p1261_p5 }
 0x4f5   : > { %p1259_p3 = pneg %p1258_p1 }
 0x4f6   : > { %p1265_p8 = por %p1264_p4, %p1263_p13 }
 0x4f8   : > { %p1266_p12 = pnand %p1265_p8, %p1259_p3 }
 0x4fa   : > { %1269 = shalt.err (!%p1266_p12)
}
 0x4fb   : > { %1071 = dma.vmem_to_hbm [thread:$0]  (%p1773_p7), %s1711_s9, 512, %s1709_s12, %s701_s19  }
 0x4fc PF: > { %p1093_p0 = scmp.ge.s32.totalorder %s1312_s18, 2  ;;  %s727_s27 = sand.u32 1, %s1300_s15  }
 0x4fd   : > { %p1774_p2 = scmp.ne.s32.totalorder %s1763_s26, 0  ;;  %s728_s28 = scalar_lea.sflag [#allocation5], %s727_s27 }
 0x4ff   : > { %p1084_p6 = pnand %p1093_p0, %p1774_p2 }
 0x501   : > { %1295 = dma.done.wait (!%p1084_p6), %s728_s28, 512  }
 0x502   : > { %1297 = vsyncadd (!%p1084_p6), %s728_s28, 4294966784  ;;  %p16_p9 = scmp.ge.s32.totalorder %s1373_s21, 4   ;;  %s1775_s15 = smov %s1304_s16 }
 0x503   : > { %s1776_s16 = smov %s1308_s17  ;;  %s1777_s17 = smov %s1384_s24 }
 0x504   : > { %s1778_s18 = smov %s1373_s21  ;;  %18 = sbr.rel (!%p16_p9) target bundleno = 5 (0x5), region = 85 }
 0x50b   :  { %733 = vsyncpa [#allocation4], 1 }
 0x50c   :  { %735 = vsyncpa [#allocation4 + $0x1], 1 }
 0x50d   :  { %736 = vsyncpa [#allocation7], 1 }
 0x50e   :  { %737 = vsyncpa [#allocation5], 1 }
 0x50f   :  { %739 = vsyncpa [#allocation5 + $0x1], 1 }

</bundles_post_ra>
